<compile_context>
chip_gen: v7x
topology: tpu7x:2x2x1
jax: 0.10.0
libtpu: 0.0.40
codegen_flags: <defaults>
</compile_context>

<pallas_src>
import jax
import jax.numpy as jnp
from jax.experimental import pallas as pl
from jax.experimental.pallas import tpu as pltpu

NEG_SLOPE = 0.01  # torch.nn.LeakyReLU default negative_slope
LANE = 128


def _round_up(x, m):
    return ((x + m - 1) // m) * m


def _vmem_limit_bytes():
    """Generation-aware VMEM budget (v5e/v6e: 128 MiB phys, v7x: 64 MiB)."""
    cap = 64 * 1024 * 1024
    try:
        info = pltpu.get_tpu_info()
        cap = int(getattr(info, "vmem_capacity_bytes", cap))
    except Exception:
        pass
    return min(40 * 1024 * 1024, cap // 2)


def predictor_kernel(x_ref, w1_ref, b1_ref, w2_ref, b2_ref, w3_ref, b3_ref, out_ref):
    # x_ref: (TB, F) real (un-padded) feature width.  Weights are pre-transposed
    # to [in, out] and zero-padded to lane width (done once, outside).
    x = x_ref[...].astype(jnp.float32)

    h1 = jax.lax.dot_general(x, w1_ref[...],
                             dimension_numbers=(((1,), (0,)), ((), ())),
                             preferred_element_type=jnp.float32)
    h1 = h1 + b1_ref[...]
    h1 = jnp.where(h1 >= 0.0, h1, NEG_SLOPE * h1)          # LeakyReLU
    # TODO(synk): nn.Dropout(0.5) is identity in eval/inference mode; training-mode
    # stochastic dropout (pltpu.prng_seed / prng_random_bits) intentionally omitted.

    h2 = jax.lax.dot_general(h1, w2_ref[...],
                             dimension_numbers=(((1,), (0,)), ((), ())),
                             preferred_element_type=jnp.float32)
    h2 = h2 + b2_ref[...]
    h2 = jnp.where(h2 >= 0.0, h2, NEG_SLOPE * h2)          # LeakyReLU

    # Final layer has a single output unit: elementwise mul + lane reduce (XLU)
    # instead of an N=1 matmul, result kept at its real width of 1 lane.
    z = jnp.sum(h2 * w3_ref[...], axis=1, keepdims=True) + b3_ref[...]   # (TB, 1)

    # Numerically stable sigmoid: exp of a non-positive argument only.
    pos = z >= 0.0
    e = jnp.exp(jnp.where(pos, -z, z))
    inv = 1.0 / (1.0 + e)
    out_ref[...] = jnp.where(pos, inv, e * inv).astype(out_ref.dtype)


def prepare_predictor_params(w1, b1, w2, b2, w3, b3, dtype=jnp.float32):
    """One-time weight prep (hoisted out of the per-call path).
    Torch nn.Linear layout in: w1:[50,F] b1:[50]  w2:[50,50] b2:[50]  w3:[1,50] b3:[1].
    Returns lane-padded, pre-transposed [in, out] weights."""
    H1, F = w1.shape
    H2 = w2.shape[0]
    O = w3.shape[0]
    assert w2.shape == (H2, H1) and w3.shape == (O, H2) and O == 1
    H1p = _round_up(H1, LANE)
    H2p = _round_up(H2, LANE)

    w1t = jnp.zeros((F, H1p), dtype).at[:, :H1].set(w1.T.astype(dtype))
    b1p = jnp.zeros((1, H1p), dtype).at[:, :H1].set(b1.astype(dtype)[None, :])
    w2t = jnp.zeros((H1p, H2p), dtype).at[:H1, :H2].set(w2.T.astype(dtype))
    b2p = jnp.zeros((1, H2p), dtype).at[:, :H2].set(b2.astype(dtype)[None, :])
    w3r = jnp.zeros((1, H2p), dtype).at[:, :H2].set(w3.astype(dtype))   # row vector
    b3p = jnp.reshape(b3.astype(dtype), (1, 1))
    return (w1t, b1p, w2t, b2p, w3r, b3p)


def predictor_forward(context_vector, params):
    """Forward pass. `params` from prepare_predictor_params (call once)."""
    w1t, b1p, w2t, b2p, w3r, b3p = params
    B, F = context_vector.shape
    assert w1t.shape[0] == F
    H1p = w1t.shape[1]
    H2p = w2t.shape[1]
    O = 1

    # ---- batch-tile sizing ------------------------------------------------
    vmem_limit = _vmem_limit_bytes()
    # Per-row VMEM footprint: double-buffered x stream + h1/h2 intermediates
    # + double-buffered output row.
    bytes_per_row = 4 * (2 * F + H1p + H2p + 2 * O)
    tb_cap = max(8, (int(0.5 * vmem_limit) // bytes_per_row) // 8 * 8)
    TB_MAX = 8192
    if B <= 8:
        TB = B                                   # full-dim block (always legal)
    else:
        # at most half the batch per tile so the grid has >=2 steps (v7x megacore)
        TB = max(8, min(tb_cap, TB_MAX, _round_up(pl.cdiv(B, 2), 8)))
    grid = (pl.cdiv(B, TB),)

    flops = 2 * B * (F * H1p + H1p * H2p + H2p * O)
    bytes_accessed = 4 * (B * F + B * O) + 4 * (F * H1p + H1p * H2p + 2 * H1p + 2 * H2p + 1)
    cost = pl.CostEstimate(flops=flops, transcendentals=B, bytes_accessed=bytes_accessed)

    out = pl.pallas_call(
        predictor_kernel,
        out_shape=jax.ShapeDtypeStruct((B, O), jnp.float32),
        grid=grid,
        in_specs=[
            pl.BlockSpec((TB, F), lambda b: (b, 0)),       # streamed, real F width
            pl.BlockSpec((F, H1p), lambda b: (0, 0)),      # grid-invariant weights
            pl.BlockSpec((1, H1p), lambda b: (0, 0)),
            pl.BlockSpec((H1p, H2p), lambda b: (0, 0)),
            pl.BlockSpec((1, H2p), lambda b: (0, 0)),
            pl.BlockSpec((1, H2p), lambda b: (0, 0)),      # w3 as a row vector
            pl.BlockSpec((1, 1), lambda b: (0, 0)),
        ],
        out_specs=pl.BlockSpec((TB, O), lambda b: (b, 0)), # (B, 1) output, no lane pad
        compiler_params=pltpu.CompilerParams(
            dimension_semantics=("parallel",),
            vmem_limit_bytes=vmem_limit,
        ),
        cost_estimate=cost,
    )(context_vector, w1t, b1p, w2t, b2p, w3r, b3p)

    return out


def reference_forward(x, w1, b1, w2, b2, w3, b3):
    """Pure-JAX reference mirroring the PyTorch module (eval mode)."""
    def leaky(v):
        return jnp.where(v >= 0.0, v, NEG_SLOPE * v)
    h1 = leaky(x @ w1.T + b1)
    h2 = leaky(h1 @ w2.T + b2)
    z = h2 @ w3.T + b3
    return jax.nn.sigmoid(z)


if __name__ == "__main__":
    F = 32  # input_size

    key = jax.random.PRNGKey(0)
    ks = jax.random.split(key, 8)

    def init_linear(kw, kb, fan_in, fan_out):
        # torch nn.Linear default init: U(-1/sqrt(fan_in), 1/sqrt(fan_in))
        bound = 1.0 / jnp.sqrt(jnp.float32(fan_in))
        w = jax.random.uniform(kw, (fan_out, fan_in), jnp.float32, -bound, bound)
        b = jax.random.uniform(kb, (fan_out,), jnp.float32, -bound, bound)
        return w, b

    w1, b1 = init_linear(ks[1], ks[2], F, 50)
    w2, b2 = init_linear(ks[3], ks[4], 50, 50)
    w3, b3 = init_linear(ks[5], ks[6], 50, 1)

    params = prepare_predictor_params(w1, b1, w2, b2, w3, b3)  # one-time prep

    # Small batch (single full-dim block).
    B = 2
    x = jax.random.normal(ks[0], (B, F), dtype=jnp.float32)
    out = jax.block_until_ready(predictor_forward(x, params))
    ref = reference_forward(x, w1, b1, w2, b2, w3, b3)
    assert out.shape == (B, 1), out.shape
    assert jnp.allclose(out, ref, atol=1e-5, rtol=1e-5)
    assert bool(jnp.all((out >= 0.0) & (out <= 1.0)))

    # Slightly larger batch to exercise the multi-step (ragged-tail) grid path.
    B2 = 20
    x2 = jax.random.normal(ks[7], (B2, F), dtype=jnp.float32)
    out2 = jax.block_until_ready(predictor_forward(x2, params))
    ref2 = reference_forward(x2, w1, b1, w2, b2, w3, b3)
    assert out2.shape == (B2, 1), out2.shape
    assert jnp.allclose(out2, ref2, atol=1e-5, rtol=1e-5)

    print("KERNEL_OK")
</pallas_src>

<mosaic_0001>
module attributes {stable_mosaic.version = 11 : i64} {
  func.func @predictor_kernel(%arg0: i32, %arg1: memref<2x32xf32, #tpu.memory_space<vmem>>, %arg2: memref<32x128xf32, #tpu.memory_space<vmem>>, %arg3: memref<1x128xf32, #tpu.memory_space<vmem>>, %arg4: memref<128x128xf32, #tpu.memory_space<vmem>>, %arg5: memref<1x128xf32, #tpu.memory_space<vmem>>, %arg6: memref<1x128xf32, #tpu.memory_space<vmem>>, %arg7: memref<1x1xf32, #tpu.memory_space<vmem>>, %arg8: memref<2x1xf32, #tpu.memory_space<vmem>>) attributes {dimension_semantics = [#tpu.dimension_semantics<parallel>], iteration_bounds = array<i64: 1>, scalar_prefetch = 0 : i64, scratch_operands = 0 : i64, tpu.core_type = #tpu.core_type<tc>, window_params = [{transform_indices = @transform_0, window_bounds = array<i64: 2, 32>}, {pipeline_mode = #tpu.pipeline_mode<synchronous>, transform_indices = @transform_1, window_bounds = array<i64: 32, 128>}, {pipeline_mode = #tpu.pipeline_mode<synchronous>, transform_indices = @transform_2, window_bounds = array<i64: 1, 128>}, {pipeline_mode = #tpu.pipeline_mode<synchronous>, transform_indices = @transform_3, window_bounds = array<i64: 128, 128>}, {pipeline_mode = #tpu.pipeline_mode<synchronous>, transform_indices = @transform_4, window_bounds = array<i64: 1, 128>}, {pipeline_mode = #tpu.pipeline_mode<synchronous>, transform_indices = @transform_5, window_bounds = array<i64: 1, 128>}, {pipeline_mode = #tpu.pipeline_mode<synchronous>, transform_indices = @transform_6, window_bounds = array<i64: 1, 1>}, {transform_indices = @transform_7, window_bounds = array<i64: 2, 1>}]} {
    %c0 = arith.constant 0 : index
    %c0_0 = arith.constant 0 : index
    %0 = vector.load %arg1[%c0, %c0_0] : memref<2x32xf32, #tpu.memory_space<vmem>>, vector<2x32xf32>
    %c0_1 = arith.constant 0 : index
    %c0_2 = arith.constant 0 : index
    %1 = vector.load %arg2[%c0_1, %c0_2] : memref<32x128xf32, #tpu.memory_space<vmem>>, vector<32x128xf32>
    %cst = arith.constant dense<0.000000e+00> : vector<2x128xf32>
    %2 = tpu.matmul %0, %1, %cst {dimension_numbers = #tpu.dot_dimension_numbers<[1], [0], [0], [1], [0, 0, 1, 1], [], []>} : vector<2x32xf32>, vector<32x128xf32>, vector<2x128xf32> -> vector<2x128xf32>
    %c0_3 = arith.constant 0 : index
    %c0_4 = arith.constant 0 : index
    %3 = vector.load %arg3[%c0_3, %c0_4] : memref<1x128xf32, #tpu.memory_space<vmem>>, vector<1x128xf32>
    %4 = vector.broadcast %3 : vector<1x128xf32> to vector<2x128xf32>
    %5 = arith.addf %2, %4 : vector<2x128xf32>
    %cst_5 = arith.constant 0.000000e+00 : f32
    %6 = vector.broadcast %cst_5 : f32 to vector<2x128xf32>
    %7 = arith.cmpf oge, %5, %6 : vector<2x128xf32>
    %cst_6 = arith.constant 0.00999999977 : f32
    %8 = vector.broadcast %cst_6 : f32 to vector<2x128xf32>
    %9 = arith.mulf %8, %5 : vector<2x128xf32>
    %10 = arith.select %7, %5, %9 : vector<2x128xi1>, vector<2x128xf32>
    %c0_7 = arith.constant 0 : index
    %c0_8 = arith.constant 0 : index
    %11 = vector.load %arg4[%c0_7, %c0_8] : memref<128x128xf32, #tpu.memory_space<vmem>>, vector<128x128xf32>
    %cst_9 = arith.constant dense<0.000000e+00> : vector<2x128xf32>
    %12 = tpu.matmul %10, %11, %cst_9 {dimension_numbers = #tpu.dot_dimension_numbers<[1], [0], [0], [1], [0, 0, 1, 1], [], []>} : vector<2x128xf32>, vector<128x128xf32>, vector<2x128xf32> -> vector<2x128xf32>
    %c0_10 = arith.constant 0 : index
    %c0_11 = arith.constant 0 : index
    %13 = vector.load %arg5[%c0_10, %c0_11] : memref<1x128xf32, #tpu.memory_space<vmem>>, vector<1x128xf32>
    %14 = vector.broadcast %13 : vector<1x128xf32> to vector<2x128xf32>
    %15 = arith.addf %12, %14 : vector<2x128xf32>
    %cst_12 = arith.constant 0.000000e+00 : f32
    %16 = vector.broadcast %cst_12 : f32 to vector<2x128xf32>
    %17 = arith.cmpf oge, %15, %16 : vector<2x128xf32>
    %cst_13 = arith.constant 0.00999999977 : f32
    %18 = vector.broadcast %cst_13 : f32 to vector<2x128xf32>
    %19 = arith.mulf %18, %15 : vector<2x128xf32>
    %20 = arith.select %17, %15, %19 : vector<2x128xi1>, vector<2x128xf32>
    %c0_14 = arith.constant 0 : index
    %c0_15 = arith.constant 0 : index
    %21 = vector.load %arg6[%c0_14, %c0_15] : memref<1x128xf32, #tpu.memory_space<vmem>>, vector<1x128xf32>
    %22 = vector.broadcast %21 : vector<1x128xf32> to vector<2x128xf32>
    %23 = arith.mulf %20, %22 : vector<2x128xf32>
    %cst_16 = arith.constant dense<0.000000e+00> : vector<2xf32>
    %24 = vector.multi_reduction <add>, %23, %cst_16 [1] : vector<2x128xf32> to vector<2xf32>
    %25 = vector.shape_cast %24 : vector<2xf32> to vector<2x1xf32>
    %c0_17 = arith.constant 0 : index
    %c0_18 = arith.constant 0 : index
    %26 = vector.load %arg7[%c0_17, %c0_18] : memref<1x1xf32, #tpu.memory_space<vmem>>, vector<1x1xf32>
    %27 = vector.broadcast %26 : vector<1x1xf32> to vector<2x1xf32>
    %28 = arith.addf %25, %27 : vector<2x1xf32>
    %cst_19 = arith.constant 0.000000e+00 : f32
    %29 = vector.broadcast %cst_19 : f32 to vector<2x1xf32>
    %30 = arith.cmpf oge, %28, %29 : vector<2x1xf32>
    %cst_20 = arith.constant 0.000000e+00 : f32
    %31 = vector.broadcast %cst_20 : f32 to vector<2x1xf32>
    %32 = arith.subf %31, %28 : vector<2x1xf32>
    %33 = arith.select %30, %32, %28 : vector<2x1xi1>, vector<2x1xf32>
    %34 = math.exp %33 : vector<2x1xf32>
    %cst_21 = arith.constant 1.000000e+00 : f32
    %35 = vector.broadcast %cst_21 : f32 to vector<2x1xf32>
    %36 = arith.addf %35, %34 : vector<2x1xf32>
    %cst_22 = arith.constant 1.000000e+00 : f32
    %37 = vector.broadcast %cst_22 : f32 to vector<2x1xf32>
    %38 = arith.divf %37, %36 : vector<2x1xf32>
    %39 = arith.mulf %34, %38 : vector<2x1xf32>
    %40 = arith.select %30, %38, %39 : vector<2x1xi1>, vector<2x1xf32>
    %c0_23 = arith.constant 0 : index
    %c0_24 = arith.constant 0 : index
    %41 = vector.load %arg8[%c0_23, %c0_24] : memref<2x1xf32, #tpu.memory_space<vmem>>, vector<2x1xf32>
    tpu.vector_store %arg8[%c0_23, %c0_24], %40 {strides = array<i32>} : memref<2x1xf32, #tpu.memory_space<vmem>>, vector<2x1xf32>,
    return
  }
  func.func @transform_0(%arg0: i32) -> (i32, i32) {
    %c0_i32 = arith.constant 0 : i32
    %c0_i32_0 = arith.constant 0 : i32
    return %arg0, %c0_i32 : i32, i32
  }
  func.func @transform_1(%arg0: i32) -> (i32, i32) {
    %c0_i32 = arith.constant 0 : i32
    %c0_i32_0 = arith.constant 0 : i32
    %c0_i32_1 = arith.constant 0 : i32
    return %c0_i32, %c0_i32_0 : i32, i32
  }
  func.func @transform_2(%arg0: i32) -> (i32, i32) {
    %c0_i32 = arith.constant 0 : i32
    %c0_i32_0 = arith.constant 0 : i32
    %c0_i32_1 = arith.constant 0 : i32
    return %c0_i32, %c0_i32_0 : i32, i32
  }
  func.func @transform_3(%arg0: i32) -> (i32, i32) {
    %c0_i32 = arith.constant 0 : i32
    %c0_i32_0 = arith.constant 0 : i32
    %c0_i32_1 = arith.constant 0 : i32
    return %c0_i32, %c0_i32_0 : i32, i32
  }
  func.func @transform_4(%arg0: i32) -> (i32, i32) {
    %c0_i32 = arith.constant 0 : i32
    %c0_i32_0 = arith.constant 0 : i32
    %c0_i32_1 = arith.constant 0 : i32
    return %c0_i32, %c0_i32_0 : i32, i32
  }
  func.func @transform_5(%arg0: i32) -> (i32, i32) {
    %c0_i32 = arith.constant 0 : i32
    %c0_i32_0 = arith.constant 0 : i32
    %c0_i32_1 = arith.constant 0 : i32
    return %c0_i32, %c0_i32_0 : i32, i32
  }
  func.func @transform_6(%arg0: i32) -> (i32, i32) {
    %c0_i32 = arith.constant 0 : i32
    %c0_i32_0 = arith.constant 0 : i32
    %c0_i32_1 = arith.constant 0 : i32
    return %c0_i32, %c0_i32_0 : i32, i32
  }
  func.func @transform_7(%arg0: i32) -> (i32, i32) {
    %c0_i32 = arith.constant 0 : i32
    %c0_i32_0 = arith.constant 0 : i32
    return %arg0, %c0_i32 : i32, i32
  }
}

</mosaic_0001>

<bundles_post_ra>
// kernel: tpu_custom_call.1
= control target key start
LH: loop header
LB: loop body
LE: loop exit
PB: predicated region body
PF: predicated region fallthrough
CT: control target
= control target key end

     0   :  { %s530_s0 = inlined_call_operand.vmem [shape: f32[2,32], index: 0, kind: input, shape index: {}]   ;;  %s531_s1 = inlined_call_operand.hbm [shape: f32[32,128], index: 1, kind: input, shape index: {}]   ;;  %s532_s2 = inlined_call_operand.vmem [shape: f32[1,128], index: 2, kind: input, shape index: {}]   ;;  %s533_s3 = inlined_call_operand.hbm [shape: f32[128,128], index: 3, kind: input, shape index: {}]   ;;  %s534_s4 = inlined_call_operand.vmem [shape: f32[1,128], index: 4, kind: input, shape index: {}]   ;;  %s535_s5 = inlined_call_operand.vmem [shape: f32[1,128], index: 5, kind: input, shape index: {}]   ;;  %s536_s6 = inlined_call_operand.<no memory space> [shape: f32[1,1], index: 6, kind: input, shape index: {}]   ;;  %s537_s7 = inlined_call_operand.vmem [shape: f32[2,1], index: 7, kind: output, shape index: {}]  }
   0x1   :  { %v12_v0 = vstv %s536_s6 }
   0x2   :  { %13 = vst [vmem:[#allocation2] sm:$0x1] %v12_v0 }
   0x3   :  { %14 = vsyncpa [#allocation4], 0 }
   0x4   :  { %15 = vsyncpa [#allocation6], 0  ;;  %s441_s26 = smov [#allocation3]   ;;  %s393_s30 = scalar_lea.hbm %s531_s1, 512 }
   0x5   :  { %s23_s27 = sshll.u32 %s441_s26, 4  ;;  %p394_p0 = scmp.ne.s32.totalorder %s531_s1, %s393_s30  ;;  %s24_s27 = int_to_ptr.vmem [resolvable:$true] %s23_s27 }
   0x6   :  { %p397_p1 = scmp.lt.u32.totalorder %s393_s30, %s531_s1 }
   0x8   :  { %p399_p2 = pnand %p397_p1, %p394_p0 }
   0xa   :  { %402 = shalt.err (!%p399_p2)
}
   0xb   :  { %s403_s6 = scalar_lea.vmem %s24_s27, 512  ;;  %p408_p4 = scmp.lt.s32.totalorder %s24_s27, %s24_s27 }
   0xc   :  { %p404_p3 = scmp.ne.s32.totalorder %s24_s27, %s403_s6  ;;  %p409_p5 = scmp.lt.s32.totalorder %s403_s6, %s403_s6 }
   0xe   :  { %p410_p6 = por %p409_p5, %p408_p4 }
  0x10   :  { %p411_p7 = pnand %p410_p6, %p404_p3 }
  0x12   :  { %414 = shalt.err (!%p411_p7)
}
  0x13   :  { %s442_s12 = smov 128   ;;  %s443_s13 = smov 8  }
  0x14   :  { %29 = dma.hbm_to_vmem [thread:$0]  %s531_s1, 512, %s24_s27, [#allocation4], %s442_s12, %s442_s12, %s443_s13  }
  0x15   :  { %s444_s16 = smov [#allocation5]   ;;  %s415_s20 = scalar_lea.hbm %s533_s3, 2048 }
  0x16   :  { %s37_s17 = sshll.u32 %s444_s16, 4  ;;  %p416_p8 = scmp.ne.s32.totalorder %s533_s3, %s415_s20  ;;  %s38_s17 = int_to_ptr.vmem [resolvable:$true] %s37_s17 }
  0x17   :  { %p419_p9 = scmp.lt.u32.totalorder %s415_s20, %s533_s3 }
  0x19   :  { %p421_p10 = pnand %p419_p9, %p416_p8 }
  0x1b   :  { %424 = shalt.err (!%p421_p10)
}
  0x1c   :  { %s425_s25 = scalar_lea.vmem %s38_s17, 2048  ;;  %p430_p12 = scmp.lt.s32.totalorder %s38_s17, %s38_s17 }
  0x1d   :  { %p426_p11 = scmp.ne.s32.totalorder %s38_s17, %s425_s25  ;;  %p431_p13 = scmp.lt.s32.totalorder %s425_s25, %s425_s25 }
  0x1f   :  { %p432_p0 = por %p431_p13, %p430_p12 }
  0x21   :  { %p433_p1 = pnand %p432_p0, %p426_p11 }
  0x23   :  { %436 = shalt.err (!%p433_p1)
}
  0x24   :  { %43 = dma.hbm_to_vmem [thread:$0]  %s533_s3, 2048, %s38_s17, [#allocation6], %s442_s12, %s442_s12, %s443_s13  }
  0x25   :  { %437 = dma.done.wait [#allocation4], 512  }
  0x26   :  { %438 = vsyncadd [#allocation4], 4294966784 }
  0x27   :  { %439 = dma.done.wait [#allocation6], 2048  }
  0x28   :  { %440 = vsyncadd [#allocation6], 4294965248  ;;  %v445_v1 = vmov 0.0|0.0   ;;  %vm446_vm0 = vmmov 0   ;;  %v447_v2 = vmov 0.0   ;;  %v57_v3 = vld [vmem:[#allocation3] sm:$0xff] }
  0x29   :  { %352 = vmatprep.subr.bf16.mxu0 %v445_v1  ;;  %314 = vmatprep.mubr.msk.f32.mxu0 %vm446_vm0, %v447_v2  ;;  %v58_v4 = vld [vmem:[#allocation3 + $0x8] sm:$0xff]  ;;  %v59_v5 = vld [vmem:[#allocation3 + $0x10] sm:$0xff]  ;;  %v60_v7 = vld [vmem:[#allocation3 + $0x18] sm:$0xff]  ;;  %vm68_vm1 = vcmask 261120   ;;  %vm249_vm4 = vcmask 1041408   ;;  %vm271_vm6 = vcmask 1024  }
  0x2a   :  { %358 = vmatprep.subr.bf16.mxu1 %v445_v1  ;;  %349 = vmatprep.mubr.msk.f32.mxu1 %vm446_vm0, %v447_v2  ;;  %v353_v6 = vpack.c.bf16 %v58_v4, %v57_v3  ;;  %v145_v8 = vld [vmem:[#allocation5] sm:$0xff]  ;;  %v146_v9 = vld [vmem:[#allocation5 + $0x8] sm:$0xff]  ;;  %v147_v10 = vld [vmem:[#allocation5 + $0x10] sm:$0xff]  ;;  %v356_v12 = vpack.c.bf16 %v60_v7, %v59_v5 }
  0x2b   :  { %v148_v11 = vld [vmem:[#allocation5 + $0x18] sm:$0xff]  ;;  %v359_v13 = vpack.c.bf16 %v146_v9, %v145_v8  ;;  %v149_v15 = vld [vmem:[#allocation5 + $0x20] sm:$0xff]  ;;  %v150_v16 = vld [vmem:[#allocation5 + $0x28] sm:$0xff] }
  0x2c   :  { %354 = vmatpush3.bf16.msra.mxu0 %v353_v6  ;;  %v362_v14 = vpack.c.bf16 %v148_v11, %v147_v10  ;;  %v56_v17 = vld [vmem:[%s530_s0] sm:$0x3]  ;;  %v365_v18 = vpack.c.bf16 %v150_v16, %v149_v15  ;;  %v151_v19 = vld [vmem:[#allocation5 + $0x30] sm:$0xff]  ;;  %v154_v23 = vld [vmem:[#allocation5 + $0x48] sm:$0xff] }
  0x2d   :  { %355 = vmatprep.subr.bf16.mxu0 %v445_v1  ;;  %360 = vmatpush3.bf16.msra.mxu1 %v359_v13  ;;  %v152_v20 = vld [vmem:[#allocation5 + $0x38] sm:$0xff]  ;;  %v153_v22 = vld [vmem:[#allocation5 + $0x40] sm:$0xff]  ;;  %v155_v25 = vld [vmem:[#allocation5 + $0x50] sm:$0xff] }
  0x2e   :  { %361 = vmatprep.subr.bf16.mxu1 %v445_v1  ;;  %v368_v21 = vpack.c.bf16 %v152_v20, %v151_v19  ;;  %v371_v24 = vpack.c.bf16 %v154_v23, %v153_v22  ;;  %v156_v26 = vld [vmem:[#allocation5 + $0x58] sm:$0xff]  ;;  %v157_v28 = vld [vmem:[#allocation5 + $0x60] sm:$0xff]  ;;  %v158_v29 = vld [vmem:[#allocation5 + $0x68] sm:$0xff] }
  0x2f   :  { %v374_v27 = vpack.c.bf16 %v156_v26, %v155_v25  ;;  %v377_v30 = vpack.c.bf16 %v158_v29, %v157_v28  ;;  %v159_v31 = vld [vmem:[#allocation5 + $0x70] sm:$0xff]  ;;  %v160_v32 = vld [vmem:[#allocation5 + $0x78] sm:$0xff] }
  0x30   :  { %357 = vmatpush3.bf16.msra.mxu0 %v356_v12  ;;  %v380_v33 = vpack.c.bf16 %v160_v32, %v159_v31  ;;  %v279_v34 = vld [vmem:[%s532_s2] ss:$0 sm:$0xff] }
  0x31   :  { %363 = vmatpush3.bf16.msra.mxu1 %v362_v14  ;;  %v281_v40 = vld [vmem:[%s534_s4] ss:$0 sm:$0xff] }
  0x32   :  { %364 = vmatprep.subr.bf16.mxu1 %v445_v1  ;;  %v282_v45 = vld [vmem:[%s535_s5] ss:$0 sm:$0xff] }
  0x33   :  { %315 = vmatmul.mubr.msk.f32.vlgmr.msra.gmra.mrb[0].mxu0 %vm68_vm1, %v56_v17  ;;  %v283_v49 = vld [vmem:[#allocation2] ss:$0 sm:$0xff] }
  0x35   :  { %366 = vmatpush3.bf16.msra.mxu1 %v365_v18 }
  0x36   :  { %367 = vmatprep.subr.bf16.mxu1 %v445_v1 }
  0x39   :  { %369 = vmatpush3.bf16.msra.mxu1 %v368_v21 }
  0x3a   :  { %370 = vmatprep.subr.bf16.mxu1 %v445_v1 }
  0x3d   :  { %372 = vmatpush3.bf16.msra.mxu1 %v371_v24 }
  0x3e   :  { %373 = vmatprep.subr.bf16.mxu1 %v445_v1 }
  0x41   :  { %375 = vmatpush3.bf16.msra.mxu1 %v374_v27 }
  0x42   :  { %376 = vmatprep.subr.bf16.mxu1 %v445_v1 }
  0x45   :  { %378 = vmatpush3.bf16.msra.mxu1 %v377_v30 }
  0x46   :  { %379 = vmatprep.subr.bf16.mxu1 %v445_v1 }
  0x49   :  { %381 = vmatpush3.bf16.msra.mxu1 %v380_v33 }
 0x106   :  { %v138_v35 = vpop.f32.mrb[0].mxu0 }
 0x107   :  { %v139_v36 = vadd.f32 %v279_v34, %v138_v35  ;;  %v316_v37 = vpop.f32.mrb[1].mxu0 }
 0x109   :  { %v143_v38 = vmul.f32 0.01, %v139_v36  ;;  %vm142_vm2 = vcmp.ge.f32.partialorder %v139_v36, 0.0 }
 0x10b   :  { %v144_v39 = vsel %vm142_vm2, %v139_v36, %v143_v38 }
 0x10c   :  { %350 = vmatmul.mubr.f32.vlgmr.msra.gmra.mrb[0].mxu1 %v144_v39 }
 0x1df   :  { %v234_v41 = vpop.f32.mrb[0].mxu1 }
 0x1e0   :  { %v235_v42 = vadd.f32 %v281_v40, %v234_v41  ;;  %v351_v43 = vpop.f32.mrb[1].mxu1 }
 0x1e2   :  { %v239_v44 = vmul.f32 0.01, %v235_v42  ;;  %vm238_vm3 = vcmp.ge.f32.partialorder %v235_v42, 0.0 }
 0x1e4   :  { %v240_v46 = vsel %vm238_vm3, %v235_v42, %v239_v44 }
 0x1e5   :  { %v248_v47 = vmul.f32 %v282_v45, %v240_v46 }
 0x1e7   :  { %v250_v48 = vsel %vm249_vm4, %v248_v47, 0.0 }
 0x1e8   :  { %251 = vadd.xlane.f32.xlu0 %v250_v48 }
 0x275   :  { %v252_v50 = vpop.xlane.xlu0 %251 }
 0x276   :  { %v260_v51 = vadd.f32 %v283_v49, %v252_v50 }
 0x278   :  { %vm261_vm5 = vcmp.ge.f32.partialorder %v260_v51, 0.0  ;;  %v262_v52 = vsub.f32 0.0, %v260_v51 }
 0x27a   :  { %v263_v53 = vsel %vm261_vm5, %v262_v52, %v260_v51 }
 0x27b   :  { %v264_v54 = vmul.f32 1.442695, %v263_v53 }
 0x27d   :  { %389 = vpow2.f32 %v264_v54 }
 0x287   :  { %v390_v55 = vpop.eup %389 }
 0x288   :  { %v266_v56 = vadd.f32 1.0, %v390_v55 }
 0x28a   :  { %391 = vrcp.f32 %v266_v56 }
 0x294   :  { %v392_v57 = vpop.eup %391 }
 0x295   :  { %v269_v58 = vmul.f32 %v392_v57, %v390_v55 }
 0x297   :  { %v270_v59 = vsel %vm261_vm5, %v392_v57, %v269_v58 }
 0x298   :  { %272 = vst.msk [vmem:[%s537_s7] sm:$0x3] %vm271_vm6, %v270_v59 }
 0x299   :  { %277 = vsyncpa [#allocation4], 1 }
 0x29a   :  { %278 = vsyncpa [#allocation6], 1 }

</bundles_post_ra>
